<compile_context>
chip_gen: v5e
topology: v5e:2x2
jax: 0.10.0
libtpu: 0.0.40
codegen_flags: <defaults>
</compile_context>

<pallas_src>
import numpy as np

import jax
import jax.numpy as jnp
from jax.experimental import pallas as pl
from jax.experimental.pallas import tpu as pltpu


_MAX_UNROLL_D = 128   # fully unroll the D loop (and bake signs) up to this many dims
_D_CHUNK = 128        # lane-aligned chunk size for the chunked (grid-axis) path


def _round_up(x: int, m: int) -> int:
    return (x + m - 1) // m * m


def _col_splits(tile_j: int, max_width: int = 256):
    """Static (offset, width) register sub-blocks along the j tile (<=32 vregs each)."""
    splits, off = [], 0
    while off < tile_j:
        w = min(max_width, tile_j - off)
        splits.append((off, w))
        off += w
    return tuple(splits)


def _make_corenet_kernel(dc, n_chunks, col_splits, signs):
    """Build the kernel body.

    dc:         embedding dims covered per grid step along axis 2 (the d block).
    n_chunks:   grid size along axis 2 (== d_pad // dc).
    col_splits: static (offset, width) sub-blocks of the j tile (register accs).
    signs:      tuple of +-1.0 per dim (len == dc, requires n_chunks == 1) when
                the |w2| prescale + static sign split is used; None -> a w2 SMEM
                operand is expected and the kernel multiplies per dim.
    """
    use_w2 = signs is None
    assert use_w2 or n_chunks == 1

    def kernel(*refs):
        if use_w2:
            w2_ref, ei_ref, ejT_ref, row_ref, col_ref, out_ref = refs
            d_step = pl.program_id(2)
            d_base = d_step * dc
        else:
            ei_ref, ejT_ref, row_ref, col_ref, out_ref = refs

        # ei_ref : (TI, dc)  left-embedding rows for this (i, d) block
        # ejT_ref: (dc, TJ)  right-embedding columns (pre-transposed) for (d, j)
        # row_ref: (TI, 1)   E @ w_left + bias, i-tile slice
        # col_ref: (1, TJ)   E @ w_right, j-tile slice
        # out_ref: (TI, TJ)  score tile (lane-dense, TJ % 128 == 0)
        row = row_ref[...]                                     # (TI, 1), hoisted

        for off, width in col_splits:                          # static sub-blocks
            js = slice(off, off + width)

            if n_chunks == 1:
                # Register accumulator, single store at the end (no per-d RMW).
                acc = row + col_ref[:, js]
            else:
                @pl.when(d_step == 0)
                def _init(js=js):
                    out_ref[:, js] = row + col_ref[:, js]
                acc = out_ref[:, js]                           # one load per chunk

            # Statically unrolled chunk: per d it is pure VPU work
            # (sub, abs, [mul,] add) on the (TI, width) register block.
            for dd in range(dc):
                diff = jnp.abs(ei_ref[:, dd:dd + 1] - ejT_ref[dd:dd + 1, js])
                if use_w2:
                    acc = acc + diff * w2_ref[d_base + dd]
                elif signs[dd] >= 0.0:
                    acc = acc + diff
                else:
                    acc = acc - diff

            out_ref[:, js] = acc                               # one store per chunk

    return kernel


def corenet_pallas(embeddings, weight, bias, *, tile_i=128, tile_j=512):
    """embeddings: (N, D) f32; weight: (1, 3D) f32; bias: (1,) f32 -> (N, N) f32."""
    N, D = embeddings.shape
    assert weight.shape == (1, 3 * D), weight.shape

    emb = embeddings.astype(jnp.float32)
    w3 = weight.reshape(3, D).astype(jnp.float32)     # rows: [w_left, w_right, w_abs]
    b = jnp.asarray(bias, jnp.float32).reshape(-1)[0]

    # O(N*D) rank-1 projections stay in XLA; bias folded into the row term.
    row_proj = emb @ w3[0] + b                        # (N,)
    col_proj = emb @ w3[1]                            # (N,)
    w_abs = w3[2]                                     # (D,)

    # Static sign split (|w2| prescale) when the weights are concrete and D is
    # small enough to unroll fully.  Removes the per-d vmul inside the kernel.
    signs = None
    if D <= _MAX_UNROLL_D:
        try:
            w_abs_host = np.asarray(w_abs)            # raises for tracers
            signs = tuple(1.0 if float(s) >= 0.0 else -1.0 for s in w_abs_host)
        except Exception:
            signs = None                              # traced weights -> multiply path

    if signs is not None:
        emb_abs = emb * jnp.abs(w_abs)[None, :]       # |e_i-e_j|*w2 == |e'_i-e'_j|*sign
        d_pad, dc = D, D
    else:
        # TODO(synk): for concrete weights with D > _MAX_UNROLL_D a static sign
        # split per chunk would also drop the per-d multiply; kept simple here.
        emb_abs = emb
        dc = D if D <= _D_CHUNK else _D_CHUNK         # chunk must be 128 or full D
        d_pad = _round_up(D, dc)
    n_chunks = d_pad // dc

    # Independent i / j padding (no lcm); sanitize tile sizes to (8, 128).
    n8, n128 = _round_up(N, 8), _round_up(N, 128)
    tile_i = max(8, min(_round_up(tile_i, 8), n8))
    tile_j = max(128, min(_round_up(tile_j, 128), n128))
    if dc > 64:
        tile_j = min(tile_j, 256)                     # bound unrolled code size
    # v7x megacore: ensure >= 2 steps on a parallel axis when possible.
    if _round_up(N, tile_i) == tile_i and _round_up(N, tile_j) == tile_j and n8 >= 16:
        tile_i = max(8, _round_up(n8 // 2, 8))
    n_pad_i = _round_up(N, tile_i)
    n_pad_j = _round_up(N, tile_j)

    ei = jnp.pad(emb_abs, ((0, n_pad_i - N), (0, d_pad - D)))       # (n_pad_i, d_pad)
    ejT = jnp.pad(emb_abs, ((0, n_pad_j - N), (0, d_pad - D))).T    # (d_pad, n_pad_j)
    row_p = jnp.pad(row_proj, (0, n_pad_i - N)).reshape(n_pad_i, 1)
    col_p = jnp.pad(col_proj, (0, n_pad_j - N)).reshape(1, n_pad_j)

    grid = (n_pad_i // tile_i, n_pad_j // tile_j, n_chunks)
    col_splits = _col_splits(tile_j)
    kernel = _make_corenet_kernel(dc, n_chunks, col_splits, signs)

    in_specs = [
        pl.BlockSpec((tile_i, dc), lambda i, j, d: (i, d)),      # left rows
        pl.BlockSpec((dc, tile_j), lambda i, j, d: (d, j)),      # right cols (pre-T)
        pl.BlockSpec((tile_i, 1), lambda i, j, d: (i, 0)),       # row projection (+bias)
        pl.BlockSpec((1, tile_j), lambda i, j, d: (0, j)),       # col projection
    ]
    operands = [ei, ejT, row_p, col_p]
    if signs is None:
        w_pad = jnp.pad(w_abs, (0, d_pad - D))
        in_specs.insert(0, pl.BlockSpec(memory_space=pltpu.MemorySpace.SMEM))
        operands.insert(0, w_pad)

    out = pl.pallas_call(
        kernel,
        out_shape=jax.ShapeDtypeStruct((n_pad_i, n_pad_j), jnp.float32),
        grid_spec=pltpu.PrefetchScalarGridSpec(
            num_scalar_prefetch=0,
            grid=grid,
            in_specs=in_specs,
            out_specs=pl.BlockSpec((tile_i, tile_j), lambda i, j, d: (i, j)),
        ),
        compiler_params=pltpu.CompilerParams(
            dimension_semantics=("parallel", "parallel", "arbitrary"),
            vmem_limit_bytes=32 * 1024 * 1024,
        ),
    )(*operands)

    return out[:N, :N]


def corenet_ref(embeddings, weight, bias):
    """Pure-JAX reference mirroring the PyTorch forward (dense form)."""
    N, D = embeddings.shape
    idx = jnp.arange(N)
    ii, jj = jnp.meshgrid(idx, idx, indexing="ij")          # cartesian_prod order
    isx = ii.reshape(-1)
    idx_dx = jj.reshape(-1)
    feats = jnp.concatenate(
        [embeddings[isx], embeddings[idx_dx],
         jnp.abs(embeddings[isx] - embeddings[idx_dx])], axis=1)     # (N*N, 3D)
    scores = feats @ weight.reshape(-1) + bias[0]                    # (N*N,)
    return scores.reshape(N, N)


if __name__ == "__main__":
    # Small shapes: N utterances, embedding dim D, linear input_dim = 3*D.
    N, D = 16, 32
    input_dim = 3 * D

    key = jax.random.PRNGKey(0)
    k_emb, k_w, k_b = jax.random.split(key, 3)

    embeddings = jax.random.normal(k_emb, (N, D), dtype=jnp.float32)

    # Deterministic Linear(3D, 1) init (PyTorch-style uniform +-1/sqrt(fan_in)).
    bound = 1.0 / float(np.sqrt(input_dim))
    weight = jax.random.uniform(k_w, (1, input_dim), jnp.float32, -bound, bound)
    bias = jax.random.uniform(k_b, (1,), jnp.float32, -bound, bound)

    ref = corenet_ref(embeddings, weight, bias)

    # Eager call: concrete weights -> |w2| prescale + static sign-split path.
    out = jax.block_until_ready(corenet_pallas(embeddings, weight, bias))
    assert out.shape == (N, N)
    assert jnp.allclose(out, ref, atol=1e-4, rtol=1e-4), "sign-split path mismatch"

    # Jitted call: traced weights -> SMEM w2-multiply fallback path.
    out_jit = jax.block_until_ready(jax.jit(corenet_pallas)(embeddings, weight, bias))
    assert jnp.allclose(out_jit, ref, atol=1e-4, rtol=1e-4), "w2-multiply path mismatch"

    # TODO(synk): torch returns a sparse COO tensor; we return its dense (N, N) equivalent.
    print("KERNEL_OK")
</pallas_src>

<mosaic_0001>
module attributes {stable_mosaic.version = 11 : i64} {
  func.func @kernel(%arg0: i32, %arg1: i32, %arg2: i32, %arg3: memref<8x32xf32, #tpu.memory_space<vmem>>, %arg4: memref<32x128xf32, #tpu.memory_space<vmem>>, %arg5: memref<8x1xf32, #tpu.memory_space<vmem>>, %arg6: memref<1x128xf32, #tpu.memory_space<vmem>>, %arg7: memref<8x128xf32, #tpu.memory_space<vmem>>) attributes {dimension_semantics = [#tpu.dimension_semantics<parallel>, #tpu.dimension_semantics<parallel>, #tpu.dimension_semantics<arbitrary>], iteration_bounds = array<i64: 2, 1, 1>, scalar_prefetch = 0 : i64, scratch_operands = 0 : i64, tpu.core_type = #tpu.core_type<tc>, window_params = [{transform_indices = @transform_0, window_bounds = array<i64: 8, 32>}, {transform_indices = @transform_1, window_bounds = array<i64: 32, 128>}, {transform_indices = @transform_2, window_bounds = array<i64: 8, 1>}, {transform_indices = @transform_3, window_bounds = array<i64: 1, 128>}, {transform_indices = @transform_4, window_bounds = array<i64: 8, 128>}]} {
    %c0 = arith.constant 0 : index
    %c0_0 = arith.constant 0 : index
    %0 = vector.load %arg5[%c0, %c0_0] : memref<8x1xf32, #tpu.memory_space<vmem>>, vector<8x1xf32>
    %c0_1 = arith.constant 0 : index
    %c0_2 = arith.constant 0 : index
    %1 = vector.load %arg6[%c0_1, %c0_2] : memref<1x128xf32, #tpu.memory_space<vmem>>, vector<1x128xf32>
    %2 = vector.broadcast %0 : vector<8x1xf32> to vector<8x128xf32>
    %3 = vector.broadcast %1 : vector<1x128xf32> to vector<8x128xf32>
    %4 = arith.addf %2, %3 : vector<8x128xf32>
    %c0_3 = arith.constant 0 : index
    %c0_4 = arith.constant 0 : index
    %5 = vector.load %arg3[%c0_3, %c0_4] : memref<8x32xf32, #tpu.memory_space<vmem>>, vector<8x1xf32>
    %c0_5 = arith.constant 0 : index
    %c0_6 = arith.constant 0 : index
    %6 = vector.load %arg4[%c0_5, %c0_6] : memref<32x128xf32, #tpu.memory_space<vmem>>, vector<1x128xf32>
    %7 = vector.broadcast %5 : vector<8x1xf32> to vector<8x128xf32>
    %8 = vector.broadcast %6 : vector<1x128xf32> to vector<8x128xf32>
    %9 = arith.subf %7, %8 : vector<8x128xf32>
    %10 = math.absf %9 : vector<8x128xf32>
    %11 = arith.addf %4, %10 : vector<8x128xf32>
    %c0_7 = arith.constant 0 : index
    %c1 = arith.constant 1 : index
    %12 = vector.load %arg3[%c0_7, %c1] : memref<8x32xf32, #tpu.memory_space<vmem>>, vector<8x1xf32>
    %c1_8 = arith.constant 1 : index
    %c0_9 = arith.constant 0 : index
    %13 = vector.load %arg4[%c1_8, %c0_9] : memref<32x128xf32, #tpu.memory_space<vmem>>, vector<1x128xf32>
    %14 = vector.broadcast %12 : vector<8x1xf32> to vector<8x128xf32>
    %15 = vector.broadcast %13 : vector<1x128xf32> to vector<8x128xf32>
    %16 = arith.subf %14, %15 : vector<8x128xf32>
    %17 = math.absf %16 : vector<8x128xf32>
    %18 = arith.addf %11, %17 : vector<8x128xf32>
    %c0_10 = arith.constant 0 : index
    %c2 = arith.constant 2 : index
    %19 = vector.load %arg3[%c0_10, %c2] : memref<8x32xf32, #tpu.memory_space<vmem>>, vector<8x1xf32>
    %c2_11 = arith.constant 2 : index
    %c0_12 = arith.constant 0 : index
    %20 = vector.load %arg4[%c2_11, %c0_12] : memref<32x128xf32, #tpu.memory_space<vmem>>, vector<1x128xf32>
    %21 = vector.broadcast %19 : vector<8x1xf32> to vector<8x128xf32>
    %22 = vector.broadcast %20 : vector<1x128xf32> to vector<8x128xf32>
    %23 = arith.subf %21, %22 : vector<8x128xf32>
    %24 = math.absf %23 : vector<8x128xf32>
    %25 = arith.addf %18, %24 : vector<8x128xf32>
    %c0_13 = arith.constant 0 : index
    %c3 = arith.constant 3 : index
    %26 = vector.load %arg3[%c0_13, %c3] : memref<8x32xf32, #tpu.memory_space<vmem>>, vector<8x1xf32>
    %c3_14 = arith.constant 3 : index
    %c0_15 = arith.constant 0 : index
    %27 = vector.load %arg4[%c3_14, %c0_15] : memref<32x128xf32, #tpu.memory_space<vmem>>, vector<1x128xf32>
    %28 = vector.broadcast %26 : vector<8x1xf32> to vector<8x128xf32>
    %29 = vector.broadcast %27 : vector<1x128xf32> to vector<8x128xf32>
    %30 = arith.subf %28, %29 : vector<8x128xf32>
    %31 = math.absf %30 : vector<8x128xf32>
    %32 = arith.subf %25, %31 : vector<8x128xf32>
    %c0_16 = arith.constant 0 : index
    %c4 = arith.constant 4 : index
    %33 = vector.load %arg3[%c0_16, %c4] : memref<8x32xf32, #tpu.memory_space<vmem>>, vector<8x1xf32>
    %c4_17 = arith.constant 4 : index
    %c0_18 = arith.constant 0 : index
    %34 = vector.load %arg4[%c4_17, %c0_18] : memref<32x128xf32, #tpu.memory_space<vmem>>, vector<1x128xf32>
    %35 = vector.broadcast %33 : vector<8x1xf32> to vector<8x128xf32>
    %36 = vector.broadcast %34 : vector<1x128xf32> to vector<8x128xf32>
    %37 = arith.subf %35, %36 : vector<8x128xf32>
    %38 = math.absf %37 : vector<8x128xf32>
    %39 = arith.addf %32, %38 : vector<8x128xf32>
    %c0_19 = arith.constant 0 : index
    %c5 = arith.constant 5 : index
    %40 = vector.load %arg3[%c0_19, %c5] : memref<8x32xf32, #tpu.memory_space<vmem>>, vector<8x1xf32>
    %c5_20 = arith.constant 5 : index
    %c0_21 = arith.constant 0 : index
    %41 = vector.load %arg4[%c5_20, %c0_21] : memref<32x128xf32, #tpu.memory_space<vmem>>, vector<1x128xf32>
    %42 = vector.broadcast %40 : vector<8x1xf32> to vector<8x128xf32>
    %43 = vector.broadcast %41 : vector<1x128xf32> to vector<8x128xf32>
    %44 = arith.subf %42, %43 : vector<8x128xf32>
    %45 = math.absf %44 : vector<8x128xf32>
    %46 = arith.addf %39, %45 : vector<8x128xf32>
    %c0_22 = arith.constant 0 : index
    %c6 = arith.constant 6 : index
    %47 = vector.load %arg3[%c0_22, %c6] : memref<8x32xf32, #tpu.memory_space<vmem>>, vector<8x1xf32>
    %c6_23 = arith.constant 6 : index
    %c0_24 = arith.constant 0 : index
    %48 = vector.load %arg4[%c6_23, %c0_24] : memref<32x128xf32, #tpu.memory_space<vmem>>, vector<1x128xf32>
    %49 = vector.broadcast %47 : vector<8x1xf32> to vector<8x128xf32>
    %50 = vector.broadcast %48 : vector<1x128xf32> to vector<8x128xf32>
    %51 = arith.subf %49, %50 : vector<8x128xf32>
    %52 = math.absf %51 : vector<8x128xf32>
    %53 = arith.subf %46, %52 : vector<8x128xf32>
    %c0_25 = arith.constant 0 : index
    %c7 = arith.constant 7 : index
    %54 = vector.load %arg3[%c0_25, %c7] : memref<8x32xf32, #tpu.memory_space<vmem>>, vector<8x1xf32>
    %c7_26 = arith.constant 7 : index
    %c0_27 = arith.constant 0 : index
    %55 = vector.load %arg4[%c7_26, %c0_27] : memref<32x128xf32, #tpu.memory_space<vmem>>, vector<1x128xf32>
    %56 = vector.broadcast %54 : vector<8x1xf32> to vector<8x128xf32>
    %57 = vector.broadcast %55 : vector<1x128xf32> to vector<8x128xf32>
    %58 = arith.subf %56, %57 : vector<8x128xf32>
    %59 = math.absf %58 : vector<8x128xf32>
    %60 = arith.addf %53, %59 : vector<8x128xf32>
    %c0_28 = arith.constant 0 : index
    %c8 = arith.constant 8 : index
    %61 = vector.load %arg3[%c0_28, %c8] : memref<8x32xf32, #tpu.memory_space<vmem>>, vector<8x1xf32>
    %c8_29 = arith.constant 8 : index
    %c0_30 = arith.constant 0 : index
    %62 = vector.load %arg4[%c8_29, %c0_30] : memref<32x128xf32, #tpu.memory_space<vmem>>, vector<1x128xf32>
    %63 = vector.broadcast %61 : vector<8x1xf32> to vector<8x128xf32>
    %64 = vector.broadcast %62 : vector<1x128xf32> to vector<8x128xf32>
    %65 = arith.subf %63, %64 : vector<8x128xf32>
    %66 = math.absf %65 : vector<8x128xf32>
    %67 = arith.subf %60, %66 : vector<8x128xf32>
    %c0_31 = arith.constant 0 : index
    %c9 = arith.constant 9 : index
    %68 = vector.load %arg3[%c0_31, %c9] : memref<8x32xf32, #tpu.memory_space<vmem>>, vector<8x1xf32>
    %c9_32 = arith.constant 9 : index
    %c0_33 = arith.constant 0 : index
    %69 = vector.load %arg4[%c9_32, %c0_33] : memref<32x128xf32, #tpu.memory_space<vmem>>, vector<1x128xf32>
    %70 = vector.broadcast %68 : vector<8x1xf32> to vector<8x128xf32>
    %71 = vector.broadcast %69 : vector<1x128xf32> to vector<8x128xf32>
    %72 = arith.subf %70, %71 : vector<8x128xf32>
    %73 = math.absf %72 : vector<8x128xf32>
    %74 = arith.subf %67, %73 : vector<8x128xf32>
    %c0_34 = arith.constant 0 : index
    %c10 = arith.constant 10 : index
    %75 = vector.load %arg3[%c0_34, %c10] : memref<8x32xf32, #tpu.memory_space<vmem>>, vector<8x1xf32>
    %c10_35 = arith.constant 10 : index
    %c0_36 = arith.constant 0 : index
    %76 = vector.load %arg4[%c10_35, %c0_36] : memref<32x128xf32, #tpu.memory_space<vmem>>, vector<1x128xf32>
    %77 = vector.broadcast %75 : vector<8x1xf32> to vector<8x128xf32>
    %78 = vector.broadcast %76 : vector<1x128xf32> to vector<8x128xf32>
    %79 = arith.subf %77, %78 : vector<8x128xf32>
    %80 = math.absf %79 : vector<8x128xf32>
    %81 = arith.addf %74, %80 : vector<8x128xf32>
    %c0_37 = arith.constant 0 : index
    %c11 = arith.constant 11 : index
    %82 = vector.load %arg3[%c0_37, %c11] : memref<8x32xf32, #tpu.memory_space<vmem>>, vector<8x1xf32>
    %c11_38 = arith.constant 11 : index
    %c0_39 = arith.constant 0 : index
    %83 = vector.load %arg4[%c11_38, %c0_39] : memref<32x128xf32, #tpu.memory_space<vmem>>, vector<1x128xf32>
    %84 = vector.broadcast %82 : vector<8x1xf32> to vector<8x128xf32>
    %85 = vector.broadcast %83 : vector<1x128xf32> to vector<8x128xf32>
    %86 = arith.subf %84, %85 : vector<8x128xf32>
    %87 = math.absf %86 : vector<8x128xf32>
    %88 = arith.addf %81, %87 : vector<8x128xf32>
    %c0_40 = arith.constant 0 : index
    %c12 = arith.constant 12 : index
    %89 = vector.load %arg3[%c0_40, %c12] : memref<8x32xf32, #tpu.memory_space<vmem>>, vector<8x1xf32>
    %c12_41 = arith.constant 12 : index
    %c0_42 = arith.constant 0 : index
    %90 = vector.load %arg4[%c12_41, %c0_42] : memref<32x128xf32, #tpu.memory_space<vmem>>, vector<1x128xf32>
    %91 = vector.broadcast %89 : vector<8x1xf32> to vector<8x128xf32>
    %92 = vector.broadcast %90 : vector<1x128xf32> to vector<8x128xf32>
    %93 = arith.subf %91, %92 : vector<8x128xf32>
    %94 = math.absf %93 : vector<8x128xf32>
    %95 = arith.addf %88, %94 : vector<8x128xf32>
    %c0_43 = arith.constant 0 : index
    %c13 = arith.constant 13 : index
    %96 = vector.load %arg3[%c0_43, %c13] : memref<8x32xf32, #tpu.memory_space<vmem>>, vector<8x1xf32>
    %c13_44 = arith.constant 13 : index
    %c0_45 = arith.constant 0 : index
    %97 = vector.load %arg4[%c13_44, %c0_45] : memref<32x128xf32, #tpu.memory_space<vmem>>, vector<1x128xf32>
    %98 = vector.broadcast %96 : vector<8x1xf32> to vector<8x128xf32>
    %99 = vector.broadcast %97 : vector<1x128xf32> to vector<8x128xf32>
    %100 = arith.subf %98, %99 : vector<8x128xf32>
    %101 = math.absf %100 : vector<8x128xf32>
    %102 = arith.subf %95, %101 : vector<8x128xf32>
    %c0_46 = arith.constant 0 : index
    %c14 = arith.constant 14 : index
    %103 = vector.load %arg3[%c0_46, %c14] : memref<8x32xf32, #tpu.memory_space<vmem>>, vector<8x1xf32>
    %c14_47 = arith.constant 14 : index
    %c0_48 = arith.constant 0 : index
    %104 = vector.load %arg4[%c14_47, %c0_48] : memref<32x128xf32, #tpu.memory_space<vmem>>, vector<1x128xf32>
    %105 = vector.broadcast %103 : vector<8x1xf32> to vector<8x128xf32>
    %106 = vector.broadcast %104 : vector<1x128xf32> to vector<8x128xf32>
    %107 = arith.subf %105, %106 : vector<8x128xf32>
    %108 = math.absf %107 : vector<8x128xf32>
    %109 = arith.subf %102, %108 : vector<8x128xf32>
    %c0_49 = arith.constant 0 : index
    %c15 = arith.constant 15 : index
    %110 = vector.load %arg3[%c0_49, %c15] : memref<8x32xf32, #tpu.memory_space<vmem>>, vector<8x1xf32>
    %c15_50 = arith.constant 15 : index
    %c0_51 = arith.constant 0 : index
    %111 = vector.load %arg4[%c15_50, %c0_51] : memref<32x128xf32, #tpu.memory_space<vmem>>, vector<1x128xf32>
    %112 = vector.broadcast %110 : vector<8x1xf32> to vector<8x128xf32>
    %113 = vector.broadcast %111 : vector<1x128xf32> to vector<8x128xf32>
    %114 = arith.subf %112, %113 : vector<8x128xf32>
    %115 = math.absf %114 : vector<8x128xf32>
    %116 = arith.addf %109, %115 : vector<8x128xf32>
    %c0_52 = arith.constant 0 : index
    %c16 = arith.constant 16 : index
    %117 = vector.load %arg3[%c0_52, %c16] : memref<8x32xf32, #tpu.memory_space<vmem>>, vector<8x1xf32>
    %c16_53 = arith.constant 16 : index
    %c0_54 = arith.constant 0 : index
    %118 = vector.load %arg4[%c16_53, %c0_54] : memref<32x128xf32, #tpu.memory_space<vmem>>, vector<1x128xf32>
    %119 = vector.broadcast %117 : vector<8x1xf32> to vector<8x128xf32>
    %120 = vector.broadcast %118 : vector<1x128xf32> to vector<8x128xf32>
    %121 = arith.subf %119, %120 : vector<8x128xf32>
    %122 = math.absf %121 : vector<8x128xf32>
    %123 = arith.subf %116, %122 : vector<8x128xf32>
    %c0_55 = arith.constant 0 : index
    %c17 = arith.constant 17 : index
    %124 = vector.load %arg3[%c0_55, %c17] : memref<8x32xf32, #tpu.memory_space<vmem>>, vector<8x1xf32>
    %c17_56 = arith.constant 17 : index
    %c0_57 = arith.constant 0 : index
    %125 = vector.load %arg4[%c17_56, %c0_57] : memref<32x128xf32, #tpu.memory_space<vmem>>, vector<1x128xf32>
    %126 = vector.broadcast %124 : vector<8x1xf32> to vector<8x128xf32>
    %127 = vector.broadcast %125 : vector<1x128xf32> to vector<8x128xf32>
    %128 = arith.subf %126, %127 : vector<8x128xf32>
    %129 = math.absf %128 : vector<8x128xf32>
    %130 = arith.addf %123, %129 : vector<8x128xf32>
    %c0_58 = arith.constant 0 : index
    %c18 = arith.constant 18 : index
    %131 = vector.load %arg3[%c0_58, %c18] : memref<8x32xf32, #tpu.memory_space<vmem>>, vector<8x1xf32>
    %c18_59 = arith.constant 18 : index
    %c0_60 = arith.constant 0 : index
    %132 = vector.load %arg4[%c18_59, %c0_60] : memref<32x128xf32, #tpu.memory_space<vmem>>, vector<1x128xf32>
    %133 = vector.broadcast %131 : vector<8x1xf32> to vector<8x128xf32>
    %134 = vector.broadcast %132 : vector<1x128xf32> to vector<8x128xf32>
    %135 = arith.subf %133, %134 : vector<8x128xf32>
    %136 = math.absf %135 : vector<8x128xf32>
    %137 = arith.subf %130, %136 : vector<8x128xf32>
    %c0_61 = arith.constant 0 : index
    %c19 = arith.constant 19 : index
    %138 = vector.load %arg3[%c0_61, %c19] : memref<8x32xf32, #tpu.memory_space<vmem>>, vector<8x1xf32>
    %c19_62 = arith.constant 19 : index
    %c0_63 = arith.constant 0 : index
    %139 = vector.load %arg4[%c19_62, %c0_63] : memref<32x128xf32, #tpu.memory_space<vmem>>, vector<1x128xf32>
    %140 = vector.broadcast %138 : vector<8x1xf32> to vector<8x128xf32>
    %141 = vector.broadcast %139 : vector<1x128xf32> to vector<8x128xf32>
    %142 = arith.subf %140, %141 : vector<8x128xf32>
    %143 = math.absf %142 : vector<8x128xf32>
    %144 = arith.subf %137, %143 : vector<8x128xf32>
    %c0_64 = arith.constant 0 : index
    %c20 = arith.constant 20 : index
    %145 = vector.load %arg3[%c0_64, %c20] : memref<8x32xf32, #tpu.memory_space<vmem>>, vector<8x1xf32>
    %c20_65 = arith.constant 20 : index
    %c0_66 = arith.constant 0 : index
    %146 = vector.load %arg4[%c20_65, %c0_66] : memref<32x128xf32, #tpu.memory_space<vmem>>, vector<1x128xf32>
    %147 = vector.broadcast %145 : vector<8x1xf32> to vector<8x128xf32>
    %148 = vector.broadcast %146 : vector<1x128xf32> to vector<8x128xf32>
    %149 = arith.subf %147, %148 : vector<8x128xf32>
    %150 = math.absf %149 : vector<8x128xf32>
    %151 = arith.subf %144, %150 : vector<8x128xf32>
    %c0_67 = arith.constant 0 : index
    %c21 = arith.constant 21 : index
    %152 = vector.load %arg3[%c0_67, %c21] : memref<8x32xf32, #tpu.memory_space<vmem>>, vector<8x1xf32>
    %c21_68 = arith.constant 21 : index
    %c0_69 = arith.constant 0 : index
    %153 = vector.load %arg4[%c21_68, %c0_69] : memref<32x128xf32, #tpu.memory_space<vmem>>, vector<1x128xf32>
    %154 = vector.broadcast %152 : vector<8x1xf32> to vector<8x128xf32>
    %155 = vector.broadcast %153 : vector<1x128xf32> to vector<8x128xf32>
    %156 = arith.subf %154, %155 : vector<8x128xf32>
    %157 = math.absf %156 : vector<8x128xf32>
    %158 = arith.addf %151, %157 : vector<8x128xf32>
    %c0_70 = arith.constant 0 : index
    %c22 = arith.constant 22 : index
    %159 = vector.load %arg3[%c0_70, %c22] : memref<8x32xf32, #tpu.memory_space<vmem>>, vector<8x1xf32>
    %c22_71 = arith.constant 22 : index
    %c0_72 = arith.constant 0 : index
    %160 = vector.load %arg4[%c22_71, %c0_72] : memref<32x128xf32, #tpu.memory_space<vmem>>, vector<1x128xf32>
    %161 = vector.broadcast %159 : vector<8x1xf32> to vector<8x128xf32>
    %162 = vector.broadcast %160 : vector<1x128xf32> to vector<8x128xf32>
    %163 = arith.subf %161, %162 : vector<8x128xf32>
    %164 = math.absf %163 : vector<8x128xf32>
    %165 = arith.subf %158, %164 : vector<8x128xf32>
    %c0_73 = arith.constant 0 : index
    %c23 = arith.constant 23 : index
    %166 = vector.load %arg3[%c0_73, %c23] : memref<8x32xf32, #tpu.memory_space<vmem>>, vector<8x1xf32>
    %c23_74 = arith.constant 23 : index
    %c0_75 = arith.constant 0 : index
    %167 = vector.load %arg4[%c23_74, %c0_75] : memref<32x128xf32, #tpu.memory_space<vmem>>, vector<1x128xf32>
    %168 = vector.broadcast %166 : vector<8x1xf32> to vector<8x128xf32>
    %169 = vector.broadcast %167 : vector<1x128xf32> to vector<8x128xf32>
    %170 = arith.subf %168, %169 : vector<8x128xf32>
    %171 = math.absf %170 : vector<8x128xf32>
    %172 = arith.addf %165, %171 : vector<8x128xf32>
    %c0_76 = arith.constant 0 : index
    %c24 = arith.constant 24 : index
    %173 = vector.load %arg3[%c0_76, %c24] : memref<8x32xf32, #tpu.memory_space<vmem>>, vector<8x1xf32>
    %c24_77 = arith.constant 24 : index
    %c0_78 = arith.constant 0 : index
    %174 = vector.load %arg4[%c24_77, %c0_78] : memref<32x128xf32, #tpu.memory_space<vmem>>, vector<1x128xf32>
    %175 = vector.broadcast %173 : vector<8x1xf32> to vector<8x128xf32>
    %176 = vector.broadcast %174 : vector<1x128xf32> to vector<8x128xf32>
    %177 = arith.subf %175, %176 : vector<8x128xf32>
    %178 = math.absf %177 : vector<8x128xf32>
    %179 = arith.subf %172, %178 : vector<8x128xf32>
    %c0_79 = arith.constant 0 : index
    %c25 = arith.constant 25 : index
    %180 = vector.load %arg3[%c0_79, %c25] : memref<8x32xf32, #tpu.memory_space<vmem>>, vector<8x1xf32>
    %c25_80 = arith.constant 25 : index
    %c0_81 = arith.constant 0 : index
    %181 = vector.load %arg4[%c25_80, %c0_81] : memref<32x128xf32, #tpu.memory_space<vmem>>, vector<1x128xf32>
    %182 = vector.broadcast %180 : vector<8x1xf32> to vector<8x128xf32>
    %183 = vector.broadcast %181 : vector<1x128xf32> to vector<8x128xf32>
    %184 = arith.subf %182, %183 : vector<8x128xf32>
    %185 = math.absf %184 : vector<8x128xf32>
    %186 = arith.addf %179, %185 : vector<8x128xf32>
    %c0_82 = arith.constant 0 : index
    %c26 = arith.constant 26 : index
    %187 = vector.load %arg3[%c0_82, %c26] : memref<8x32xf32, #tpu.memory_space<vmem>>, vector<8x1xf32>
    %c26_83 = arith.constant 26 : index
    %c0_84 = arith.constant 0 : index
    %188 = vector.load %arg4[%c26_83, %c0_84] : memref<32x128xf32, #tpu.memory_space<vmem>>, vector<1x128xf32>
    %189 = vector.broadcast %187 : vector<8x1xf32> to vector<8x128xf32>
    %190 = vector.broadcast %188 : vector<1x128xf32> to vector<8x128xf32>
    %191 = arith.subf %189, %190 : vector<8x128xf32>
    %192 = math.absf %191 : vector<8x128xf32>
    %193 = arith.subf %186, %192 : vector<8x128xf32>
    %c0_85 = arith.constant 0 : index
    %c27 = arith.constant 27 : index
    %194 = vector.load %arg3[%c0_85, %c27] : memref<8x32xf32, #tpu.memory_space<vmem>>, vector<8x1xf32>
    %c27_86 = arith.constant 27 : index
    %c0_87 = arith.constant 0 : index
    %195 = vector.load %arg4[%c27_86, %c0_87] : memref<32x128xf32, #tpu.memory_space<vmem>>, vector<1x128xf32>
    %196 = vector.broadcast %194 : vector<8x1xf32> to vector<8x128xf32>
    %197 = vector.broadcast %195 : vector<1x128xf32> to vector<8x128xf32>
    %198 = arith.subf %196, %197 : vector<8x128xf32>
    %199 = math.absf %198 : vector<8x128xf32>
    %200 = arith.addf %193, %199 : vector<8x128xf32>
    %c0_88 = arith.constant 0 : index
    %c28 = arith.constant 28 : index
    %201 = vector.load %arg3[%c0_88, %c28] : memref<8x32xf32, #tpu.memory_space<vmem>>, vector<8x1xf32>
    %c28_89 = arith.constant 28 : index
    %c0_90 = arith.constant 0 : index
    %202 = vector.load %arg4[%c28_89, %c0_90] : memref<32x128xf32, #tpu.memory_space<vmem>>, vector<1x128xf32>
    %203 = vector.broadcast %201 : vector<8x1xf32> to vector<8x128xf32>
    %204 = vector.broadcast %202 : vector<1x128xf32> to vector<8x128xf32>
    %205 = arith.subf %203, %204 : vector<8x128xf32>
    %206 = math.absf %205 : vector<8x128xf32>
    %207 = arith.addf %200, %206 : vector<8x128xf32>
    %c0_91 = arith.constant 0 : index
    %c29 = arith.constant 29 : index
    %208 = vector.load %arg3[%c0_91, %c29] : memref<8x32xf32, #tpu.memory_space<vmem>>, vector<8x1xf32>
    %c29_92 = arith.constant 29 : index
    %c0_93 = arith.constant 0 : index
    %209 = vector.load %arg4[%c29_92, %c0_93] : memref<32x128xf32, #tpu.memory_space<vmem>>, vector<1x128xf32>
    %210 = vector.broadcast %208 : vector<8x1xf32> to vector<8x128xf32>
    %211 = vector.broadcast %209 : vector<1x128xf32> to vector<8x128xf32>
    %212 = arith.subf %210, %211 : vector<8x128xf32>
    %213 = math.absf %212 : vector<8x128xf32>
    %214 = arith.addf %207, %213 : vector<8x128xf32>
    %c0_94 = arith.constant 0 : index
    %c30 = arith.constant 30 : index
    %215 = vector.load %arg3[%c0_94, %c30] : memref<8x32xf32, #tpu.memory_space<vmem>>, vector<8x1xf32>
    %c30_95 = arith.constant 30 : index
    %c0_96 = arith.constant 0 : index
    %216 = vector.load %arg4[%c30_95, %c0_96] : memref<32x128xf32, #tpu.memory_space<vmem>>, vector<1x128xf32>
    %217 = vector.broadcast %215 : vector<8x1xf32> to vector<8x128xf32>
    %218 = vector.broadcast %216 : vector<1x128xf32> to vector<8x128xf32>
    %219 = arith.subf %217, %218 : vector<8x128xf32>
    %220 = math.absf %219 : vector<8x128xf32>
    %221 = arith.subf %214, %220 : vector<8x128xf32>
    %c0_97 = arith.constant 0 : index
    %c31 = arith.constant 31 : index
    %222 = vector.load %arg3[%c0_97, %c31] : memref<8x32xf32, #tpu.memory_space<vmem>>, vector<8x1xf32>
    %c31_98 = arith.constant 31 : index
    %c0_99 = arith.constant 0 : index
    %223 = vector.load %arg4[%c31_98, %c0_99] : memref<32x128xf32, #tpu.memory_space<vmem>>, vector<1x128xf32>
    %224 = vector.broadcast %222 : vector<8x1xf32> to vector<8x128xf32>
    %225 = vector.broadcast %223 : vector<1x128xf32> to vector<8x128xf32>
    %226 = arith.subf %224, %225 : vector<8x128xf32>
    %227 = math.absf %226 : vector<8x128xf32>
    %228 = arith.addf %221, %227 : vector<8x128xf32>
    %c0_100 = arith.constant 0 : index
    %c0_101 = arith.constant 0 : index
    %229 = vector.load %arg7[%c0_100, %c0_101] : memref<8x128xf32, #tpu.memory_space<vmem>>, vector<8x128xf32>
    tpu.vector_store %arg7[%c0_100, %c0_101], %228 {strides = array<i32>} : memref<8x128xf32, #tpu.memory_space<vmem>>, vector<8x128xf32>,
    return
  }
  func.func @transform_0(%arg0: i32, %arg1: i32, %arg2: i32) -> (i32, i32) {
    %c0_i32 = arith.constant 0 : i32
    return %arg0, %arg2 : i32, i32
  }
  func.func @transform_1(%arg0: i32, %arg1: i32, %arg2: i32) -> (i32, i32) {
    %c0_i32 = arith.constant 0 : i32
    return %arg2, %arg1 : i32, i32
  }
  func.func @transform_2(%arg0: i32, %arg1: i32, %arg2: i32) -> (i32, i32) {
    %c0_i32 = arith.constant 0 : i32
    %c0_i32_0 = arith.constant 0 : i32
    return %arg0, %c0_i32 : i32, i32
  }
  func.func @transform_3(%arg0: i32, %arg1: i32, %arg2: i32) -> (i32, i32) {
    %c0_i32 = arith.constant 0 : i32
    %c0_i32_0 = arith.constant 0 : i32
    return %c0_i32, %arg1 : i32, i32
  }
  func.func @transform_4(%arg0: i32, %arg1: i32, %arg2: i32) -> (i32, i32) {
    %c0_i32 = arith.constant 0 : i32
    return %arg0, %arg1 : i32, i32
  }
}

</mosaic_0001>

<bundles_post_ra>
// kernel: tpu_custom_call.1
= control target key start
LH: loop header
LB: loop body
LE: loop exit
PB: predicated region body
PF: predicated region fallthrough
CT: control target
= control target key end

     0   :  { %9 = vsyncpa [#allocation3], 0  ;;  %s1213_s0 = inlined_call_operand.vmem [shape: f32[16,32], index: 0, kind: input, shape index: {}]   ;;  %s1214_s1 = inlined_call_operand.hbm [shape: f32[32,128], index: 1, kind: input, shape index: {}]   ;;  %s1215_s2 = inlined_call_operand.vmem [shape: f32[16,1], index: 2, kind: input, shape index: {}]   ;;  %s1216_s3 = inlined_call_operand.vmem [shape: f32[1,128], index: 3, kind: input, shape index: {}]   ;;  %s1217_s4 = inlined_call_operand.hbm [shape: f32[16,128], index: 4, kind: output, shape index: {}]  }
   0x1   :  { %10 = vsyncpa [#allocation4], 0 }
   0x2   :  { %12 = vsyncpa [#allocation4 + $0x1], 0  ;;  %s1073_s15 = smov 0   ;;  %s1075_s16 = smov 0  }
   0x3   :  { %s1077_s17 = smov 0   ;;  %s1079_s18 = smov 0  }
   0x4   :  { %s1081_s19 = smov 0   ;;  %s1083_s20 = smov 0  }
   0x5 LB: > { %s718_s21 = sadd.s32 4294967295, %s1011_s20   ;;  %s719_s22 = sadd.s32 4294967294, %s1011_s20   ;;  %s1011_s20 = sphi %s1083_s20, %s18_s20   ;;  %s1007_s19 = sphi %s1081_s19, %s1224_s19   ;;  %s1003_s18 = sphi %s1079_s18, %s1223_s18   ;;  %s999_s17 = sphi %s1077_s17, %s1222_s17   ;;  %s995_s16 = sphi %s1075_s16, %s1221_s16   ;;  %s991_s15 = sphi %s1073_s15, %s1220_s15  }
   0x6   : > { %s37_s23 = sadd.s32 1, %s1007_s19  ;;  %s154_s24 = sadd.s32 1, %s999_s17 }
   0x7   : > { %p39_p0 = scmp.ge.s32.totalorder %s37_s23, 2  ;;  %p164_p1 = scmp.ne.s32.totalorder %s999_s17, %s995_s16 }
   0x8   : > { %p165_p2 = scmp.eq.s32.totalorder %s718_s21, 1  ;;  %p170_p3 = scmp.ne.s32.totalorder %s995_s16, %s991_s15 }
   0x9   : > { %s1226_s23 = smov (%p39_p0, %s37_s23), 0  ;;  %p171_p5 = scmp.eq.s32.totalorder %s719_s22, 1 }
   0xa   : > { %p1113_p4 = por %p165_p2, %p164_p1  ;;  %s149_s26 = ssub.s32 %s1007_s19, %s1226_s23 }
   0xb   : > { %p720_p6 = scmp.ge.s32.totalorder %s1011_s20, 1  ;;  %p152_p7 = scmp.eq.s32.totalorder %s149_s26, 0 }
   0xc   : > { %p1120_p8 = por %p171_p5, %p170_p3  ;;  %p178_p9 = scmp.lt.s32.totalorder %s1011_s20, 3 }
   0xd   : > { %s1126_s28 = scalar_select %p152_p7, %s999_s17, %s154_s24  }
   0xe   : > { %p179_p10 = pnand %p720_p6, %p178_p9  ;;  %p747_p11 = scmp.eq.s32.totalorder %s718_s21, 0 }
   0xf   : > { %s193_s5 = sshll.u32 %s1214_s1, 4  ;;  %s1013_s6 = smov [#allocation2]   ;;  %s194_s5 = int_to_ptr.hbm [resolvable:$true] %s193_s5 }
  0x10   : > { %p739_p12 = pneg %p179_p10  ;;  %s195_s7 = sshll.u32 %s1013_s6, 4  ;;  %s196_s7 = int_to_ptr.vmem [resolvable:$true] %s195_s7 }
  0x11   : > { %s1014_s8 = smov 128   ;;  %s1015_s9 = smov 8  }
  0x12   : > { %p740_p13 = pnand %p747_p11, %p739_p12  ;;  %234 = sbr.rel (%p179_p10) target bundleno = 263 (0x107), region = 36 }
  0x14   : > { %742 = dma.hbm_to_vmem [thread:$0]  (!%p740_p13), %s194_s5, 512, %s196_s7, [#allocation3], %s1014_s8, %s1014_s8, %s1015_s9  }
  0x17   : > { %982 = dma.done.wait (%p747_p11), [#allocation3], 512  }
  0x18   : > { %984 = vsyncadd (%p747_p11), [#allocation3], 4294966784  ;;  %p270_p0 = scmp.lt.s32.totalorder %s1003_s18, 1  ;;  %v1016_v0 = vmov 1   ;;  %v1017_v1 = vmov 0   ;;  %v1018_v2 = vmov 3  }
  0x19   : > { %834 = vset.pattern.permute.xlu1 %v1016_v0  ;;  %833 = vset.pattern.permute.xlu0 %v1017_v1  ;;  %v1019_v5 = vmov 2   ;;  %v1020_v6 = vmov 4   ;;  %v1021_v7 = vmov 5   ;;  %v1022_v8 = vmov 6   ;;  %v866_v38 = vld [vmem:[#allocation2 + $0x1] ss:$0 sm:$0xff] }
  0x1a   : > { %s271_s10 = scalar_select %p270_p0, %s1003_s18, 1  ;;  %836 = vset.pattern.permute.xlu2 %v1018_v2  ;;  %v1023_v9 = vmov 7   ;;  %v1024_v10 = vmov 10   ;;  %v1025_v11 = vmov 8   ;;  %v1026_v12 = vmov 9  }
  0x1b   : > { %v1027_v13 = vmov 15   ;;  %v1028_v14 = vmov 11   ;;  %v1029_v15 = vmov 12   ;;  %v1030_v16 = vmov 20   ;;  %v867_v39 = vld [vmem:[%s1216_s3] ss:$0 sm:$0xff] }
  0x1c   : > { %s727_s11 = sshll.u32 %s271_s10, 3  ;;  %v1031_v17 = vmov 13   ;;  %v1032_v18 = vmov 14   ;;  %v1033_v19 = vmov 25   ;;  %v1034_v20 = vmov 16   ;;  %s267_s30 = sand.u32 1, %s995_s16  }
  0x1d   : > { %s276_s14 = scalar_lea.vmem %s1213_s0, %s727_s11  ;;  %s281_s24 = scalar_lea.vmem %s1215_s2, %s727_s11  ;;  %v1035_v21 = vmov 17   ;;  %v1036_v22 = vmov 18   ;;  %v1037_v23 = vmov 19   ;;  %v1038_v24 = vmov 30   ;;  %v869_v40 = vld [vmem:[#allocation2] ss:$0 sm:$0xff] }
  0x1e   : > { %v1139_v3 = vld [vmem:[%s276_s14] sm:$0xff]  ;;  %v1039_v25 = vmov 21   ;;  %v1040_v26 = vmov 22   ;;  %v1041_v27 = vmov 31   ;;  %v1042_v28 = vmov 23   ;;  %s726_s5 = sshll.u32 %s267_s30, 3 }
  0x1f   : > { %v285_v4 = vld [vmem:[%s281_s24] sm:$0xff]  ;;  %309 = vperm.xlu1 %834, %v1139_v3   ;;  %327 = vperm.xlu2 %836, %v1139_v3   ;;  %v1043_v29 = vmov 24   ;;  %v1044_v30 = vmov 26   ;;  %v1045_v31 = vmov 27   ;;  %v1046_v32 = vmov 28   ;;  %s730_s6 = sshll.u32 %s1003_s18, 3 }
  0x20   : > { %289 = vperm.xlu0 %833, %v285_v4   ;;  %v1047_v33 = vmov 29   ;;  %v870_v43 = vld [vmem:[#allocation2 + $0x2] ss:$0 sm:$0xff]  ;;  %v868_v49 = vld [vmem:[#allocation2 + $0x3] ss:$0 sm:$0xff]  ;;  %s599_s9 = scalar_lea.hbm %s1217_s4, %s730_s6  ;;  %s269_s10 = scalar_lea.vmem [#allocation5], %s726_s5 }
  0x21   : > { %v871_v56 = vld [vmem:[#allocation2 + $0x4] ss:$0 sm:$0xff]  ;;  %v873_v60 = vld [vmem:[#allocation2 + $0x5] ss:$0 sm:$0xff]  ;;  %s601_s11 = sshll.u32 %s269_s10, 4  ;;  %s603_s12 = sshll.u32 %s599_s9, 4  ;;  %s602_s11 = int_to_ptr.vmem [resolvable:$true] %s601_s11  ;;  %s604_s12 = int_to_ptr.hbm [resolvable:$true] %s603_s12 }
  0x22   : > { %s588_s18 = scalar_lea.sflag [#allocation4], %s267_s30  ;;  %s943_s13 = sshra.s32 %s604_s12, 4  ;;  %s944_s13 = int_to_ptr.hbm [resolvable:$true] %s943_s13 }
  0x23   : > { %s945_s14 = scalar_lea.hbm %s944_s13, 8  ;;  %s949_s24 = scalar_lea.hbm %s1217_s4, 16 }
  0x24   : > { %p946_p1 = scmp.ne.s32.totalorder %s944_s13, %s945_s14  ;;  %p950_p5 = scmp.lt.s32.totalorder %s944_s13, %s1217_s4 }
  0x25   : > { %p951_p6 = scmp.lt.s32.totalorder %s949_s24, %s945_s14 }
  0x26   : > { %p947_p2 = pnand %p946_p1, %p1113_p4 }
  0x27   : > { %835 = vset.pattern.permute.xlu1 %v1019_v5  ;;  %837 = vset.pattern.permute.xlu2 %v1020_v6  ;;  %v874_v6 = vld [vmem:[#allocation2 + $0x7] ss:$0 sm:$0xff]  ;;  %p952_p7 = por %p951_p6, %p950_p5 }
  0x28   : > { %300 = vperm.xlu0 %833, %v1139_v3   ;;  %318 = vperm.xlu1 %835, %v1139_v3   ;;  %p948_p3 = pneg %p947_p2 }
  0x29   : > { %336 = vperm.xlu2 %837, %v1139_v3  }
  0x2a   : > { %p953_p9 = pnand %p952_p7, %p948_p3 }
  0x30   : > { %838 = vset.pattern.permute.xlu0 %v1021_v7  ;;  %839 = vset.pattern.permute.xlu1 %v1022_v8 }
  0x31   : > { %345 = vperm.xlu0 %838, %v1139_v3   ;;  %354 = vperm.xlu1 %839, %v1139_v3  }
  0x32   : > { %840 = vset.pattern.permute.xlu2 %v1023_v9 }
  0x33   : > { %363 = vperm.xlu2 %840, %v1139_v3  }
  0x39   : > { %843 = vset.pattern.permute.xlu0 %v1024_v10  ;;  %841 = vset.pattern.permute.xlu1 %v1025_v11  ;;  %v875_v10 = vld [vmem:[#allocation2 + $0x8] ss:$0 sm:$0xff] }
  0x3a   : > { %390 = vperm.xlu0 %843, %v1139_v3   ;;  %372 = vperm.xlu1 %841, %v1139_v3  }
  0x3b   : > { %842 = vset.pattern.permute.xlu2 %v1026_v12 }
  0x3c   : > { %381 = vperm.xlu2 %842, %v1139_v3  }
  0x42   : > { %848 = vset.pattern.permute.xlu0 %v1027_v13  ;;  %844 = vset.pattern.permute.xlu1 %v1028_v14 }
  0x43   : > { %435 = vperm.xlu0 %848, %v1139_v3   ;;  %399 = vperm.xlu1 %844, %v1139_v3  }
  0x44   : > { %845 = vset.pattern.permute.xlu2 %v1029_v15  ;;  %v876_v15 = vld [vmem:[#allocation2 + $0x9] ss:$0 sm:$0xff] }
  0x45   : > { %408 = vperm.xlu2 %845, %v1139_v3  }
  0x4b   : > { %853 = vset.pattern.permute.xlu0 %v1030_v16  ;;  %846 = vset.pattern.permute.xlu1 %v1031_v17 }
  0x4c   : > { %480 = vperm.xlu0 %853, %v1139_v3   ;;  %417 = vperm.xlu1 %846, %v1139_v3  }
  0x4d   : > { %847 = vset.pattern.permute.xlu2 %v1032_v18 }
  0x4e   : > { %426 = vperm.xlu2 %847, %v1139_v3  }
  0x54   : > { %858 = vset.pattern.permute.xlu0 %v1033_v19  ;;  %849 = vset.pattern.permute.xlu1 %v1034_v20  ;;  %v877_v20 = vld [vmem:[#allocation2 + $0xa] ss:$0 sm:$0xff] }
  0x55   : > { %525 = vperm.xlu0 %858, %v1139_v3   ;;  %444 = vperm.xlu1 %849, %v1139_v3  }
  0x56   : > { %850 = vset.pattern.permute.xlu2 %v1035_v21 }
  0x57   : > { %453 = vperm.xlu2 %850, %v1139_v3  }
  0x5d   : > { %851 = vset.pattern.permute.xlu1 %v1036_v22  ;;  %863 = vset.pattern.permute.xlu0 %v1038_v24 }
  0x5e   : > { %462 = vperm.xlu1 %851, %v1139_v3   ;;  %570 = vperm.xlu0 %863, %v1139_v3  }
  0x5f   : > { %852 = vset.pattern.permute.xlu2 %v1037_v23 }
  0x60   : > { %471 = vperm.xlu2 %852, %v1139_v3  }
  0x66   : > { %854 = vset.pattern.permute.xlu1 %v1039_v25  ;;  %865 = vset.pattern.permute.xlu0 %v1041_v27  ;;  %v878_v25 = vld [vmem:[#allocation2 + $0xb] ss:$0 sm:$0xff] }
  0x67   : > { %489 = vperm.xlu1 %854, %v1139_v3  }
  0x68   : > { %855 = vset.pattern.permute.xlu2 %v1040_v26 }
  0x69   : > { %498 = vperm.xlu2 %855, %v1139_v3  }
  0x6f   : > { %856 = vset.pattern.permute.xlu1 %v1042_v28 }
  0x70   : > { %507 = vperm.xlu1 %856, %v1139_v3  }
  0x71   : > { %857 = vset.pattern.permute.xlu2 %v1043_v29 }
  0x72   : > { %516 = vperm.xlu2 %857, %v1139_v3  }
  0x78   : > { %859 = vset.pattern.permute.xlu1 %v1044_v30  ;;  %v879_v30 = vld [vmem:[#allocation2 + $0xc] ss:$0 sm:$0xff] }
  0x79   : > { %534 = vperm.xlu1 %859, %v1139_v3   ;;  %v328_v34 = vpop.permute.xlu2 %327 }
  0x7a   : > { %860 = vset.pattern.permute.xlu2 %v1045_v31  ;;  %v331_v54 = vsub.f32 %v328_v34, %v868_v49 }
  0x7b   : > { %543 = vperm.xlu2 %860, %v1139_v3  }
  0x7c   : > { %v332_v62 = vand.u32 2147483647, %v331_v54 }
  0x81   : > { %861 = vset.pattern.permute.xlu1 %v1046_v32 }
  0x82   : > { %552 = vperm.xlu1 %861, %v1139_v3  }
  0x83   : > { %862 = vset.pattern.permute.xlu2 %v1047_v33  ;;  %v337_v35 = vpop.permute.xlu2 %336  ;;  %v880_v33 = vld [vmem:[#allocation2 + $0xd] ss:$0 sm:$0xff] }
  0x84   : > { %561 = vperm.xlu2 %862, %v1139_v3   ;;  %v340_v63 = vsub.f32 %v337_v35, %v871_v56 }
  0x86   : > { %v341_v2 = vand.u32 2147483647, %v340_v63 }
  0x8a   : > { %864 = vset.pattern.permute.xlu1 %v1041_v27 }
  0x8b   : > { %579 = vperm.xlu1 %864, %v1139_v3   ;;  %v872_v3 = vld [vmem:[#allocation2 + $0x6] ss:$0 sm:$0xff] }
  0x8d   : > { %v364_v41 = vpop.permute.xlu2 %363 }
  0x8e   : > { %v367_v12 = vsub.f32 %v364_v41, %v874_v6  ;;  %v887_v6 = vld [vmem:[#allocation2 + $0x14] ss:$0 sm:$0xff] }
  0x90   : > { %v368_v17 = vand.u32 2147483647, %v367_v12 }
  0x91   : > { %v310_v36 = vpop.permute.xlu1 %309 }
  0x92   : > { %v290_v37 = vpop.permute.xlu0 %289  ;;  %v313_v44 = vsub.f32 %v310_v36, %v866_v38 }
  0x93   : > { %v295_v45 = vadd.f32 %v867_v39, %v290_v37 }
  0x94   : > { %v314_v51 = vand.u32 2147483647, %v313_v44 }
  0x96   : > { %v382_v57 = vpop.permute.xlu2 %381 }
  0x97   : > { %v385_v19 = vsub.f32 %v382_v57, %v876_v15  ;;  %v889_v15 = vld [vmem:[#allocation2 + $0x16] ss:$0 sm:$0xff] }
  0x99   : > { %v386_v27 = vand.u32 2147483647, %v385_v19 }
  0x9a   : > { %v301_v42 = vpop.permute.xlu0 %300  ;;  %v319_v47 = vpop.permute.xlu1 %318 }
  0x9b   : > { %v304_v46 = vsub.f32 %v301_v42, %v869_v40  ;;  %v322_v50 = vsub.f32 %v319_v47, %v870_v43  ;;  %v881_v40 = vld [vmem:[#allocation2 + $0xe] ss:$0 sm:$0xff] }
  0x9d   : > { %v305_v48 = vand.u32 2147483647, %v304_v46  ;;  %v323_v55 = vand.u32 2147483647, %v322_v50 }
  0x9f   : > { %v306_v52 = vadd.f32 %v305_v48, %v295_v45  ;;  %v409_v7 = vpop.permute.xlu2 %408  ;;  %v882_v45 = vld [vmem:[#allocation2 + $0xf] ss:$0 sm:$0xff]  ;;  %v883_v48 = vld [vmem:[#allocation2 + $0x10] ss:$0 sm:$0xff] }
  0xa0   : > { %v412_v36 = vsub.f32 %v409_v7, %v879_v30  ;;  %v892_v30 = vld [vmem:[#allocation2 + $0x19] ss:$0 sm:$0xff] }
  0xa1   : > { %v315_v53 = vadd.f32 %v314_v51, %v306_v52 }
  0xa2   : > { %v413_v42 = vand.u32 2147483647, %v412_v36 }
  0xa3   : > { %v324_v58 = vadd.f32 %v323_v55, %v315_v53  ;;  %v355_v59 = vpop.permute.xlu1 %354  ;;  %v346_v61 = vpop.permute.xlu0 %345  ;;  %v884_v55 = vld [vmem:[#allocation2 + $0x11] ss:$0 sm:$0xff] }
  0xa4   : > { %v349_v1 = vsub.f32 %v346_v61, %v873_v60  ;;  %v358_v9 = vsub.f32 %v355_v59, %v872_v3 }
  0xa5   : > { %v333_v0 = vsub.f32 %v324_v58, %v332_v62  ;;  %v885_v58 = vld [vmem:[#allocation2 + $0x12] ss:$0 sm:$0xff] }
  0xa6   : > { %v350_v5 = vand.u32 2147483647, %v349_v1  ;;  %v359_v13 = vand.u32 2147483647, %v358_v9  ;;  %v888_v9 = vld [vmem:[#allocation2 + $0x15] ss:$0 sm:$0xff] }
  0xa7   : > { %v342_v4 = vadd.f32 %v341_v2, %v333_v0  ;;  %v886_v0 = vld [vmem:[#allocation2 + $0x13] ss:$0 sm:$0xff] }
  0xa8   : > { %v427_v22 = vpop.permute.xlu2 %426 }
  0xa9   : > { %v351_v11 = vadd.f32 %v350_v5, %v342_v4  ;;  %v430_v44 = vsub.f32 %v427_v22, %v881_v40 }
  0xab   : > { %v360_v16 = vsub.f32 %v351_v11, %v359_v13  ;;  %v431_v51 = vand.u32 2147483647, %v430_v44 }
  0xac   : > { %v373_v8 = vpop.permute.xlu1 %372  ;;  %v391_v23 = vpop.permute.xlu0 %390 }
  0xad   : > { %v376_v14 = vsub.f32 %v373_v8, %v875_v10  ;;  %v369_v24 = vadd.f32 %v368_v17, %v360_v16  ;;  %v394_v28 = vsub.f32 %v391_v23, %v877_v20  ;;  %v891_v23 = vld [vmem:[#allocation2 + $0x18] ss:$0 sm:$0xff] }
  0xaf   : > { %v377_v18 = vand.u32 2147483647, %v376_v14  ;;  %v395_v32 = vand.u32 2147483647, %v394_v28 }
  0xb1   : > { %v378_v26 = vsub.f32 %v369_v24, %v377_v18  ;;  %v454_v37 = vpop.permute.xlu2 %453 }
  0xb2   : > { %v457_v60 = vsub.f32 %v454_v37, %v884_v55 }
  0xb3   : > { %v387_v31 = vsub.f32 %v378_v26, %v386_v27 }
  0xb4   : > { %v458_v2 = vand.u32 2147483647, %v457_v60 }
  0xb5   : > { %v400_v21 = vpop.permute.xlu1 %399  ;;  %v396_v38 = vadd.f32 %v395_v32, %v387_v31  ;;  %v436_v46 = vpop.permute.xlu0 %435 }
  0xb6   : > { %v403_v29 = vsub.f32 %v400_v21, %v878_v25  ;;  %v439_v52 = vsub.f32 %v436_v46, %v882_v45  ;;  %v890_v21 = vld [vmem:[#allocation2 + $0x17] ss:$0 sm:$0xff]  ;;  %v896_v45 = vld [vmem:[#allocation2 + $0x1d] ss:$0 sm:$0xff] }
  0xb8   : > { %v404_v35 = vand.u32 2147483647, %v403_v29  ;;  %v440_v57 = vand.u32 2147483647, %v439_v52 }
  0xba   : > { %v405_v41 = vadd.f32 %v404_v35, %v396_v38  ;;  %v472_v53 = vpop.permute.xlu2 %471 }
  0xbb   : > { %v475_v5 = vsub.f32 %v472_v53, %v886_v0  ;;  %v897_v53 = vld [vmem:[#allocation2 + $0x1e] ss:$0 sm:$0xff] }
  0xbc   : > { %v414_v47 = vadd.f32 %v413_v42, %v405_v41 }
  0xbd   : > { %v476_v11 = vand.u32 2147483647, %v475_v5 }
  0xbe   : > { %v418_v34 = vpop.permute.xlu1 %417  ;;  %v481_v7 = vpop.permute.xlu0 %480 }
  0xbf   : > { %v421_v39 = vsub.f32 %v418_v34, %v880_v33  ;;  %v484_v12 = vsub.f32 %v481_v7, %v887_v6  ;;  %v893_v34 = vld [vmem:[#allocation2 + $0x1a] ss:$0 sm:$0xff] }
  0xc1   : > { %v422_v43 = vand.u32 2147483647, %v421_v39  ;;  %v485_v17 = vand.u32 2147483647, %v484_v12  ;;  %v894_v39 = vld [vmem:[#allocation2 + $0x1b] ss:$0 sm:$0xff] }
  0xc3   : > { %v423_v50 = vsub.f32 %v414_v47, %v422_v43  ;;  %v499_v3 = vpop.permute.xlu2 %498  ;;  %v895_v47 = vld [vmem:[#allocation2 + $0x1c] ss:$0 sm:$0xff] }
  0xc4   : > { %v502_v20 = vsub.f32 %v499_v3, %v889_v15 }
  0xc5   : > { %v432_v56 = vsub.f32 %v423_v50, %v431_v51 }
  0xc6   : > { %v503_v26 = vand.u32 2147483647, %v502_v20 }
  0xc7   : > { %v445_v49 = vpop.permute.xlu1 %444  ;;  %v441_v62 = vadd.f32 %v440_v57, %v432_v56  ;;  %v526_v31 = vpop.permute.xlu0 %525 }
  0xc8   : > { %v448_v54 = vsub.f32 %v445_v49, %v883_v48  ;;  %v529_v37 = vsub.f32 %v526_v31, %v892_v30 }
  0xca   : > { %v449_v59 = vand.u32 2147483647, %v448_v54  ;;  %v530_v42 = vand.u32 2147483647, %v529_v37 }
  0xcc   : > { %v450_v1 = vsub.f32 %v441_v62, %v449_v59  ;;  %v517_v18 = vpop.permute.xlu2 %516 }
  0xcd   : > { %v520_v29 = vsub.f32 %v517_v18, %v891_v23 }
  0xce   : > { %v459_v8 = vadd.f32 %v458_v2, %v450_v1 }
  0xcf   : > { %v521_v36 = vand.u32 2147483647, %v520_v29 }
  0xd0   : > { %v463_v61 = vpop.permute.xlu1 %462  ;;  %v571_v55 = vpop.permute.xlu0 %570 }
  0xd1   : > { %v466_v63 = vsub.f32 %v463_v61, %v885_v58  ;;  %v574_v59 = vsub.f32 %v571_v55, %v897_v53  ;;  %v898_v61 = vld [vmem:[#allocation2 + $0x1f] ss:$0 sm:$0xff] }
  0xd3   : > { %v467_v4 = vand.u32 2147483647, %v466_v63  ;;  %v575_v63 = vand.u32 2147483647, %v574_v59 }
  0xd5   : > { %v468_v10 = vsub.f32 %v459_v8, %v467_v4  ;;  %v544_v33 = vpop.permute.xlu2 %543 }
  0xd6   : > { %v547_v44 = vsub.f32 %v544_v33, %v894_v39 }
  0xd7   : > { %v477_v16 = vsub.f32 %v468_v10, %v476_v11 }
  0xd8   : > { %v548_v50 = vand.u32 2147483647, %v547_v44 }
  0xd9   : > { %v490_v13 = vpop.permute.xlu1 %489  ;;  %v486_v22 = vsub.f32 %v477_v16, %v485_v17 }
  0xda   : > { %v493_v14 = vsub.f32 %v490_v13, %v888_v9 }
  0xdc   : > { %v494_v19 = vand.u32 2147483647, %v493_v14 }
  0xde   : > { %v495_v25 = vadd.f32 %v494_v19, %v486_v22  ;;  %v562_v48 = vpop.permute.xlu2 %561 }
  0xdf   : > { %v565_v52 = vsub.f32 %v562_v48, %v896_v45 }
  0xe0   : > { %v504_v32 = vsub.f32 %v495_v25, %v503_v26 }
  0xe1   : > { %v566_v58 = vand.u32 2147483647, %v565_v52 }
  0xe2   : > { %v508_v24 = vpop.permute.xlu1 %507 }
  0xe3   : > { %v511_v27 = vsub.f32 %v508_v24, %v890_v21 }
  0xe5   : > { %v512_v28 = vand.u32 2147483647, %v511_v27 }
  0xe7   : > { %v513_v35 = vadd.f32 %v512_v28, %v504_v32 }
  0xe9   : > { %v522_v41 = vsub.f32 %v513_v35, %v521_v36 }
  0xeb   : > { %v535_v38 = vpop.permute.xlu1 %534  ;;  %v531_v46 = vadd.f32 %v530_v42, %v522_v41 }
  0xec   : > { %v538_v40 = vsub.f32 %v535_v38, %v893_v34 }
  0xee   : > { %v539_v43 = vand.u32 2147483647, %v538_v40 }
  0xf0   : > { %v540_v49 = vsub.f32 %v531_v46, %v539_v43 }
  0xf2   : > { %v549_v56 = vadd.f32 %v548_v50, %v540_v49 }
  0xf4   : > { %v553_v51 = vpop.permute.xlu1 %552 }
  0xf5   : > { %v556_v54 = vsub.f32 %v553_v51, %v895_v47 }
  0xf7   : > { %v557_v57 = vand.u32 2147483647, %v556_v54 }
  0xf9   : > { %v558_v60 = vadd.f32 %v557_v57, %v549_v56 }
  0xfb   : > { %v567_v62 = vadd.f32 %v566_v58, %v558_v60 }
  0xfd   : > { %v580_v0 = vpop.permute.xlu1 %579  ;;  %v576_v2 = vsub.f32 %v567_v62, %v575_v63 }
  0xfe   : > { %v583_v1 = vsub.f32 %v580_v0, %v898_v61 }
 0x100   : > { %v584_v3 = vand.u32 2147483647, %v583_v1 }
 0x102   : > { %v585_v4 = vadd.f32 %v584_v3, %v576_v2 }
 0x104   : > { %586 = vst [vmem:[%s269_s10] sm:$0xff] %v585_v4 }
 0x105   : > { %956 = shalt.err (!%p953_p9)
}
 0x106   : > { %737 = dma.vmem_to_hbm [thread:$0]  (%p1113_p4), %s602_s11, 128, %s604_s12, %s588_s18  }
 0x107 PF: > { %p749_p10 = scmp.ge.s32.totalorder %s1011_s20, 2  ;;  %s615_s30 = sand.u32 1, %s991_s15  }
 0x108   : > { %s616_s5 = scalar_lea.sflag [#allocation4], %s615_s30 }
 0x109   : > { %p744_p11 = pnand %p749_p10, %p1120_p8 }
 0x10b   : > { %p745_p12 = pneg %p744_p11 }
 0x10d   : > { %986 = dma.done.wait (%p745_p12), %s616_s5, 128  }
 0x10e   : > { %988 = vsyncadd (%p745_p12), %s616_s5, 4294967168  ;;  %s18_s20 = sadd.s32 1, %s1011_s20   ;;  %s1220_s15 = smov %s995_s16 }
 0x10f   : > { %p15_p13 = scmp.ge.s32.totalorder %s18_s20, 4   ;;  %s1221_s16 = smov %s999_s17 }
 0x110   : > { %s1222_s17 = smov %s1126_s28  ;;  %s1223_s18 = smov %s1007_s19 }
 0x111   : > { %s1224_s19 = smov %s1226_s23  ;;  %17 = sbr.rel (!%p15_p13) target bundleno = 5 (0x5), region = 83 }
 0x116   :  { %622 = vsyncpa [#allocation3], 1 }
 0x117   :  { %624 = vsyncpa [#allocation3 + $0x1], 1 }
 0x118   :  { %625 = vsyncpa [#allocation4], 1 }
 0x119   :  { %627 = vsyncpa [#allocation4 + $0x1], 1 }

</bundles_post_ra>
